<compile_context>
chip_gen: v7x
topology: tpu7x:2x2x1
jax: 0.10.0
libtpu: 0.0.40
codegen_flags: <defaults>
</compile_context>

<pallas_src>
import jax
import jax.numpy as jnp
from jax.experimental import pallas as pl
from jax.experimental.pallas import tpu as pltpu


# ----------------------------------------------------------------------------
# Kernel
# ----------------------------------------------------------------------------
def _spectral_block_kernel(xr_ref, xi_ref, wt_ref, wb_ref, o_ref):
    # xr_ref, xi_ref: (TM, B, Cin)       -- real / imag of x_ft modes
    # wt_ref, wb_ref: (TM, Cin, 2*Cout)  -- [wr | wi], [-wi | wr] per mode
    # o_ref:          (TM, B, 2*Cout)    -- [Re | Im] of the complex matmul
    acc = jnp.einsum('mbi,mio->mbo', xr_ref[...], wt_ref[...],
                     preferred_element_type=jnp.float32)
    acc = acc + jnp.einsum('mbi,mio->mbo', xi_ref[...], wb_ref[...],
                           preferred_element_type=jnp.float32)
    # TODO(synk): for configs with 2*Cout < 128 the store is a masked vst.msk;
    # padding Cout up to 64 lanes (or folding B*2Cout into one lane-dense dim)
    # would speed the store tail at the cost of extra zero weight traffic.
    o_ref[...] = acc.astype(o_ref.dtype)


# ----------------------------------------------------------------------------
# Tile planning (generation aware, layout-padded VMEM accounting)
# ----------------------------------------------------------------------------
def _round_up(x, n):
    return -(-x // n) * n


def _tile_bytes(sub, lane, dtype):
    """Bytes one (sub, lane) slab actually occupies after (8,128) tiling.
    Sub-32-bit dtypes pack along sublanes -> sublane alignment 16 (bf16)."""
    d = jnp.dtype(dtype)
    sub_align = max(8, 32 // d.itemsize)           # f32: 8, bf16: 16, int8: 32
    return _round_up(max(sub, 1), sub_align) * _round_up(max(lane, 1), 128) * d.itemsize


def _plan_tiles(M, B, Cin, Cout, compute_dtype):
    """Pick TM (modes per grid step), padded mode count, and a vmem limit."""
    Cout2 = 2 * Cout
    try:
        vmem_cap = int(getattr(pltpu.get_tpu_info(), "vmem_capacity_bytes",
                               64 << 20))
    except Exception:                              # off-TPU tracing fallback
        vmem_cap = 64 << 20                        # conservative (v7x-sized)

    # Double-buffered working-set target: ~3/8 of physical VMEM, capped at
    # 28 MiB -> ~28 MiB on v5e/v6e (128 MiB), ~24 MiB on v7x (64 MiB).
    budget = min(vmem_cap * 3 // 8, 28 << 20)

    per_mode = 2 * (                                # x2: double-buffered blocks
        2 * _tile_bytes(B, Cin, compute_dtype)      # xr, xi
        + 2 * _tile_bytes(Cin, Cout2, compute_dtype)  # w_top, w_bot
        + _tile_bytes(B, Cout2, jnp.float32))       # f32 output block

    tm = max(1, budget // per_mode)
    if M >= 4:
        tm = min(tm, pl.cdiv(M, 4))   # keep >=4 grid steps (>=2 per TC on v7x)
    tm = int(min(tm, M))
    grid = int(pl.cdiv(M, tm))
    tm = int(pl.cdiv(M, grid))        # rebalance so the tail block is not mostly pad
    m_pad = grid * tm

    vmem_limit = per_mode * tm + per_mode * tm // 4 + (2 << 20)   # +25% headroom
    vmem_limit = int(min(max(vmem_limit, 16 << 20), vmem_cap * 7 // 8))
    return tm, m_pad, vmem_limit


# ----------------------------------------------------------------------------
# Wrapper around pallas_call
# ----------------------------------------------------------------------------
def compl_mul1d_pallas(x_modes, w_top, w_bot, tm, vmem_limit_bytes, compute_dtype):
    """einsum('bix,iox->box') for complex operands via packed real matmuls.

    x_modes: complex64 (B, Cin, M)
    w_top:   (m_pad, Cin, 2*Cout)  = [wr | wi]   per mode (compute_dtype)
    w_bot:   (m_pad, Cin, 2*Cout)  = [-wi | wr]  per mode (compute_dtype)
    returns: complex64 (B, Cout, M)
    """
    B, Cin, M = x_modes.shape
    m_pad, _, Cout2 = w_top.shape
    Cout = Cout2 // 2

    # Mode axis first so each grid step is a stack of (B,Cin)@(Cin,2Cout) matmuls.
    # TODO(synk): this transpose (and the output transpose below) is wrapper-side
    # HBM traffic proportional to the activation size; for weight-bound configs
    # it is small, for very large B it could move into the kernel via an XLU
    # transpose of the block.
    xr = jnp.transpose(jnp.real(x_modes), (2, 0, 1)).astype(compute_dtype)  # (M,B,Cin)
    xi = jnp.transpose(jnp.imag(x_modes), (2, 0, 1)).astype(compute_dtype)
    if m_pad != M:  # pad activations so TM divides the mode axis (padded modes = 0)
        pad = ((0, m_pad - M), (0, 0), (0, 0))
        xr = jnp.pad(xr, pad)
        xi = jnp.pad(xi, pad)

    grid = m_pad // tm
    out = pl.pallas_call(
        _spectral_block_kernel,
        out_shape=jax.ShapeDtypeStruct((m_pad, B, Cout2), jnp.float32),
        grid_spec=pltpu.PrefetchScalarGridSpec(
            num_scalar_prefetch=0,
            grid=(grid,),
            in_specs=[
                pl.BlockSpec((tm, B, Cin), lambda g: (g, 0, 0)),
                pl.BlockSpec((tm, B, Cin), lambda g: (g, 0, 0)),
                pl.BlockSpec((tm, Cin, Cout2), lambda g: (g, 0, 0)),
                pl.BlockSpec((tm, Cin, Cout2), lambda g: (g, 0, 0)),
            ],
            out_specs=pl.BlockSpec((tm, B, Cout2), lambda g: (g, 0, 0)),
        ),
        compiler_params=pltpu.CompilerParams(
            # TODO(synk): on v7x, verify the mode axis is actually split across
            # both TensorCores; if one core idles, switch to pltpu.CORE_PARALLEL.
            dimension_semantics=(pltpu.PARALLEL,),
            vmem_limit_bytes=vmem_limit_bytes,
        ),
    )(xr, xi, w_top, w_bot)

    out = out[:M]                                                    # (M, B, 2Cout)
    out_c = (out[:, :, :Cout] + 1j * out[:, :, Cout:]).astype(jnp.complex64)
    return jnp.transpose(out_c, (1, 2, 0))                           # (B, Cout, M)


# ----------------------------------------------------------------------------
# Module
# ----------------------------------------------------------------------------
class SpectralConv1d:
    """JAX/Pallas port of the PyTorch SpectralConv1d module."""

    def __init__(self, in_channels, out_channels, modes1, key,
                 compute_dtype=jnp.bfloat16):
        self.in_channels = in_channels
        self.out_channels = out_channels
        self.modes1 = modes1
        self.compute_dtype = compute_dtype

        scale = 1.0 / (in_channels * out_channels)
        kr, ki = jax.random.split(key)
        shape = (in_channels, out_channels, modes1)
        # torch.rand(..., dtype=torch.cdouble): real & imag both ~ U[0, 1)
        w_re = scale * jax.random.uniform(kr, shape, dtype=jnp.float32)
        w_im = scale * jax.random.uniform(ki, shape, dtype=jnp.float32)
        self.weights1 = (w_re + 1j * w_im).astype(jnp.complex64)  # reference param

        # Prepack ONCE: per mode m,
        #   W_top = [wr | wi],  W_bot = [-wi | wr]
        # so that  xr @ W_top + xi @ W_bot = [Re | Im] of the complex matmul.
        wt = jnp.concatenate([w_re, w_im], axis=1)            # (Cin, 2Cout, M)
        wb = jnp.concatenate([-w_im, w_re], axis=1)            # (Cin, 2Cout, M)
        self._w_top = jnp.transpose(wt, (2, 0, 1)).astype(compute_dtype)  # (M,Cin,2Cout)
        self._w_bot = jnp.transpose(wb, (2, 0, 1)).astype(compute_dtype)
        self._w_pad_cache = {}                                 # m_pad -> (w_top, w_bot)

    def _padded_weights(self, m_pad):
        if m_pad == self.modes1:
            return self._w_top, self._w_bot
        if m_pad not in self._w_pad_cache:
            pad = ((0, m_pad - self.modes1), (0, 0), (0, 0))
            self._w_pad_cache[m_pad] = (jnp.pad(self._w_top, pad),
                                        jnp.pad(self._w_bot, pad))
        return self._w_pad_cache[m_pad]

    def __call__(self, x):
        # x: float32 (B, C_in, N)
        B, _, N = x.shape
        # TODO(synk): rfft/irfft have no Pallas TPU primitive; done in plain JAX.
        x_ft = jnp.fft.rfft(x, axis=-1)                        # (B, Cin, N//2+1) c64

        tm, m_pad, vmem_limit = _plan_tiles(
            self.modes1, B, self.in_channels, self.out_channels, self.compute_dtype)
        w_top, w_bot = self._padded_weights(m_pad)

        out_modes = compl_mul1d_pallas(
            x_ft[:, :, : self.modes1], w_top, w_bot, tm, vmem_limit,
            self.compute_dtype)                                # (B, Cout, M)

        out_ft = jnp.zeros((B, self.out_channels, N // 2 + 1), dtype=jnp.complex64)
        out_ft = out_ft.at[:, :, : self.modes1].set(out_modes)
        return jnp.fft.irfft(out_ft, n=N, axis=-1)             # (B, Cout, N) f32


# ----------------------------------------------------------------------------
# Pure-JAX reference (mirrors the PyTorch forward)
# ----------------------------------------------------------------------------
def _ref_forward(x, weights, out_channels, modes1):
    B, _, N = x.shape
    x_ft = jnp.fft.rfft(x, axis=-1)
    out = jnp.einsum('bix,iox->box', x_ft[:, :, :modes1], weights)
    out_ft = jnp.zeros((B, out_channels, N // 2 + 1), dtype=jnp.complex64)
    out_ft = out_ft.at[:, :, :modes1].set(out)
    return jnp.fft.irfft(out_ft, n=N, axis=-1)


if __name__ == "__main__":
    B, C_IN, C_OUT, N, MODES = 2, 4, 4, 16, 8

    key = jax.random.PRNGKey(0)
    kx, kw = jax.random.split(key)
    x = jax.random.normal(kx, (B, C_IN, N), dtype=jnp.float32)

    # Full-precision path (strict check against the f32/complex64 reference).
    layer_f32 = SpectralConv1d(C_IN, C_OUT, MODES, kw, compute_dtype=jnp.float32)
    y_f32 = jax.block_until_ready(layer_f32(x))

    # Default bf16-streaming path (perf configuration; looser tolerance).
    layer_bf16 = SpectralConv1d(C_IN, C_OUT, MODES, kw)   # compute_dtype=bfloat16
    y_bf16 = jax.block_until_ready(layer_bf16(x))

    y_ref = jax.block_until_ready(_ref_forward(x, layer_f32.weights1, C_OUT, MODES))

    assert y_f32.shape == (B, C_OUT, N), y_f32.shape
    assert y_f32.dtype == jnp.float32, y_f32.dtype
    assert jnp.allclose(y_f32, y_ref, rtol=1e-4, atol=1e-4), \
        float(jnp.max(jnp.abs(y_f32 - y_ref)))

    assert y_bf16.shape == (B, C_OUT, N), y_bf16.shape
    assert y_bf16.dtype == jnp.float32, y_bf16.dtype
    assert jnp.allclose(y_bf16, y_ref, rtol=5e-2, atol=5e-2), \
        float(jnp.max(jnp.abs(y_bf16 - y_ref)))

    print("KERNEL_OK")
</pallas_src>

<mosaic_0001>
module attributes {stable_mosaic.version = 11 : i64} {
  func.func @_spectral_block_kernel(%arg0: i32, %arg1: memref<2x2x4xf32, #tpu.memory_space<vmem>>, %arg2: memref<2x2x4xf32, #tpu.memory_space<vmem>>, %arg3: memref<2x4x8xf32, #tpu.memory_space<vmem>>, %arg4: memref<2x4x8xf32, #tpu.memory_space<vmem>>, %arg5: memref<2x2x8xf32, #tpu.memory_space<vmem>>) attributes {dimension_semantics = [#tpu.dimension_semantics<parallel>], iteration_bounds = array<i64: 4>, scalar_prefetch = 0 : i64, scratch_operands = 0 : i64, tpu.core_type = #tpu.core_type<tc>, window_params = [{transform_indices = @transform_0, window_bounds = array<i64: 2, 2, 4>}, {transform_indices = @transform_1, window_bounds = array<i64: 2, 2, 4>}, {transform_indices = @transform_2, window_bounds = array<i64: 2, 4, 8>}, {transform_indices = @transform_3, window_bounds = array<i64: 2, 4, 8>}, {transform_indices = @transform_4, window_bounds = array<i64: 2, 2, 8>}]} {
    %c0 = arith.constant 0 : index
    %c0_0 = arith.constant 0 : index
    %c0_1 = arith.constant 0 : index
    %0 = vector.load %arg1[%c0, %c0_0, %c0_1] : memref<2x2x4xf32, #tpu.memory_space<vmem>>, vector<2x2x4xf32>
    %c0_2 = arith.constant 0 : index
    %c0_3 = arith.constant 0 : index
    %c0_4 = arith.constant 0 : index
    %1 = vector.load %arg3[%c0_2, %c0_3, %c0_4] : memref<2x4x8xf32, #tpu.memory_space<vmem>>, vector<2x4x8xf32>
    "tpu.trace_start"() <{level = 10 : i32, message = "mbi,mio->mbo"}> : () -> ()
    %cst = arith.constant dense<0.000000e+00> : vector<2x2x8xf32>
    %2 = tpu.matmul %0, %1, %cst {dimension_numbers = #tpu.dot_dimension_numbers<[2], [1], [1], [2], [0, 0, 0, 1, 1, 2], [0], [0]>} : vector<2x2x4xf32>, vector<2x4x8xf32>, vector<2x2x8xf32> -> vector<2x2x8xf32>
    "tpu.trace_stop"() : () -> ()
    %c0_5 = arith.constant 0 : index
    %c0_6 = arith.constant 0 : index
    %c0_7 = arith.constant 0 : index
    %3 = vector.load %arg2[%c0_5, %c0_6, %c0_7] : memref<2x2x4xf32, #tpu.memory_space<vmem>>, vector<2x2x4xf32>
    %c0_8 = arith.constant 0 : index
    %c0_9 = arith.constant 0 : index
    %c0_10 = arith.constant 0 : index
    %4 = vector.load %arg4[%c0_8, %c0_9, %c0_10] : memref<2x4x8xf32, #tpu.memory_space<vmem>>, vector<2x4x8xf32>
    "tpu.trace_start"() <{level = 10 : i32, message = "mbi,mio->mbo"}> : () -> ()
    %cst_11 = arith.constant dense<0.000000e+00> : vector<2x2x8xf32>
    %5 = tpu.matmul %3, %4, %cst_11 {dimension_numbers = #tpu.dot_dimension_numbers<[2], [1], [1], [2], [0, 0, 0, 1, 1, 2], [0], [0]>} : vector<2x2x4xf32>, vector<2x4x8xf32>, vector<2x2x8xf32> -> vector<2x2x8xf32>
    "tpu.trace_stop"() : () -> ()
    %6 = arith.addf %2, %5 : vector<2x2x8xf32>
    %c0_12 = arith.constant 0 : index
    %c0_13 = arith.constant 0 : index
    %c0_14 = arith.constant 0 : index
    %7 = vector.load %arg5[%c0_12, %c0_13, %c0_14] : memref<2x2x8xf32, #tpu.memory_space<vmem>>, vector<2x2x8xf32>
    tpu.vector_store %arg5[%c0_12, %c0_13, %c0_14], %6 {strides = array<i32>} : memref<2x2x8xf32, #tpu.memory_space<vmem>>, vector<2x2x8xf32>,
    return
  }
  func.func @transform_0(%arg0: i32) -> (i32, i32, i32) {
    %c0_i32 = arith.constant 0 : i32
    %c0_i32_0 = arith.constant 0 : i32
    %c0_i32_1 = arith.constant 0 : i32
    return %arg0, %c0_i32, %c0_i32_0 : i32, i32, i32
  }
  func.func @transform_1(%arg0: i32) -> (i32, i32, i32) {
    %c0_i32 = arith.constant 0 : i32
    %c0_i32_0 = arith.constant 0 : i32
    %c0_i32_1 = arith.constant 0 : i32
    return %arg0, %c0_i32, %c0_i32_0 : i32, i32, i32
  }
  func.func @transform_2(%arg0: i32) -> (i32, i32, i32) {
    %c0_i32 = arith.constant 0 : i32
    %c0_i32_0 = arith.constant 0 : i32
    %c0_i32_1 = arith.constant 0 : i32
    return %arg0, %c0_i32, %c0_i32_0 : i32, i32, i32
  }
  func.func @transform_3(%arg0: i32) -> (i32, i32, i32) {
    %c0_i32 = arith.constant 0 : i32
    %c0_i32_0 = arith.constant 0 : i32
    %c0_i32_1 = arith.constant 0 : i32
    return %arg0, %c0_i32, %c0_i32_0 : i32, i32, i32
  }
  func.func @transform_4(%arg0: i32) -> (i32, i32, i32) {
    %c0_i32 = arith.constant 0 : i32
    %c0_i32_0 = arith.constant 0 : i32
    %c0_i32_1 = arith.constant 0 : i32
    return %arg0, %c0_i32, %c0_i32_0 : i32, i32, i32
  }
}

</mosaic_0001>

<bundles_post_ra>
// kernel: tpu_custom_call.1
= control target key start
LH: loop header
LB: loop body
LE: loop exit
PB: predicated region body
PF: predicated region fallthrough
CT: control target
= control target key end

     0   :  { %9 = vsyncpa [#allocation3], 0  ;;  %s1152_s0 = inlined_call_operand.vmem [shape: f32[8,2,4], index: 0, kind: input, shape index: {}]   ;;  %s1153_s1 = inlined_call_operand.vmem [shape: f32[8,2,4], index: 1, kind: input, shape index: {}]   ;;  %s1154_s2 = inlined_call_operand.vmem [shape: f32[8,4,8], index: 2, kind: input, shape index: {}]   ;;  %s1155_s3 = inlined_call_operand.hbm [shape: f32[8,4,8], index: 3, kind: input, shape index: {}]   ;;  %s1156_s4 = inlined_call_operand.hbm [shape: f32[8,2,8], index: 4, kind: output, shape index: {}]  }
   0x1   :  { %11 = vsyncpa [#allocation3 + $0x1], 0 }
   0x2   :  { %12 = vsyncpa [#allocation4], 0 }
   0x3   :  { %14 = vsyncpa [#allocation4 + $0x1], 0  ;;  %s969_s15 = smov 0   ;;  %s971_s16 = smov 0  }
   0x4   :  { %s973_s17 = smov 0   ;;  %s975_s18 = smov 0  }
   0x5 LB: > { %s990_s19 = sadd.s32 4294967295, %s934_s18   ;;  %s724_s20 = sadd.s32 4294967294, %s934_s18   ;;  %s934_s18 = sphi %s975_s18, %s1168_s18   ;;  %s930_s17 = sphi %s973_s17, %s1167_s17   ;;  %s926_s16 = sphi %s971_s16, %s1166_s16   ;;  %s922_s15 = sphi %s969_s15, %s1165_s15  }
   0x6   : > { %s994_s21 = sadd.s32 1, %s934_s18   ;;  %s105_s22 = sadd.s32 1, %s930_s17 }
   0x7   : > { %s102_s23 = ssub.s32 %s934_s18, %s994_s21  ;;  %p112_p0 = scmp.ne.s32.totalorder %s930_s17, %s926_s16 }
   0x8   : > { %p103_p1 = scmp.eq.s32.totalorder %s102_s23, 0  ;;  %p113_p2 = scmp.eq.s32.totalorder %s934_s18, 0 }
   0x9   : > { %p118_p3 = scmp.ne.s32.totalorder %s926_s16, %s922_s15  ;;  %p119_p4 = scmp.eq.s32.totalorder %s990_s19, 0 }
   0xa   : > { %s1006_s24 = scalar_select %p103_p1, %s930_s17, %s105_s22  }
   0xb   : > { %p1008_p5 = por %p113_p2, %p112_p0  ;;  %p1012_p6 = por %p119_p4, %p118_p3 }
   0xc   : > { %p142_p7 = scmp.eq.s32.totalorder %s990_s19, 3  ;;  %p148_p8 = scmp.eq.s32.totalorder %s724_s20, 3 }
   0xd   : > { %p798_p9 = scmp.lt.s32.totalorder %s934_s18, 4  ;;  %s195_s29 = sand.u32 1, %s930_s17  }
   0xe   : > { %p1018_p10 = por %p142_p7, %p112_p0  ;;  %p1022_p11 = por %p148_p8, %p118_p3 }
   0xf   : > { %s752_s30 = sshll.u32 %s934_s18, 7  ;;  %s727_s5 = sshll.u32 %s195_s29, 3 }
  0x10   : > { %s1160_s27 = scalar_select %p1018_p10, 1, 0 }
  0x11   : > { %s1161_s28 = scalar_select %p1022_p11, 1, 0 }
  0x12   : > { %s1031_s8 = scalar_lea.hbm %s1155_s3, %s752_s30  ;;  %s199_s9 = scalar_lea.vmem [#allocation2], %s727_s5 }
  0x13   : > { %s206_s10 = sshll.u32 %s199_s9, 4  ;;  %p1035_p12 = pnand %p798_p9, %p1008_p5  ;;  %s1039_s10 = int_to_ptr.vmem [resolvable:$true] %s206_s10 }
  0x14   : > { %s1041_s12 = scalar_lea.sflag [#allocation3], %s195_s29  ;;  %s838_s13 = scalar_lea.hbm %s1031_s8, 128 }
  0x15   : > { %p839_p13 = scmp.ne.s32.totalorder %s1031_s8, %s838_s13  ;;  %p840_p0 = pneg %p1035_p12 }
  0x16   : > { %s843_s22 = scalar_lea.hbm %s1155_s3, 512  ;;  %p844_p3 = scmp.lt.u32.totalorder %s1031_s8, %s1155_s3 }
  0x17   : > { %p841_p1 = pnand %p840_p0, %p839_p13  ;;  %p845_p4 = scmp.lt.u32.totalorder %s843_s22, %s838_s13 }
  0x18   : > { %p847_p7 = scmp.lt.u32.totalorder %s838_s13, %s1031_s8 }
  0x19   : > { %p842_p2 = pneg %p841_p1  ;;  %p846_p5 = por %p845_p4, %p844_p3 }
  0x1b   : > { %p848_p8 = por %p847_p7, %p846_p5 }
  0x1d   : > { %p849_p9 = pnand %p848_p8, %p842_p2 }
  0x1f   : > { %852 = shalt.err (!%p849_p9)
}
  0x20   : > { %s853_s29 = scalar_lea.vmem %s1039_s10, 128  ;;  %s936_s30 = smov [#allocation2]  }
  0x21   : > { %p854_p13 = scmp.ne.s32.totalorder %s1039_s10, %s853_s29  ;;  %s858_s5 = sshll.u32 %s936_s30, 4  ;;  %s859_s5 = int_to_ptr.vmem [resolvable:$false] %s858_s5 }
  0x22   : > { %s860_s6 = scalar_lea.vmem %s859_s5, 256  ;;  %p861_p10 = scmp.lt.s32.totalorder %s1039_s10, %s859_s5 }
  0x23   : > { %p856_p1 = pnand %p854_p13, %p840_p0  ;;  %p862_p3 = scmp.lt.s32.totalorder %s860_s6, %s853_s29 }
  0x25   : > { %p857_p11 = pneg %p856_p1  ;;  %p863_p4 = por %p862_p3, %p861_p10 }
  0x27   : > { %p864_p5 = pnand %p863_p4, %p857_p11 }
  0x29   : > { %867 = shalt.err (!%p864_p5)
}
  0x2a   : > { %s937_s7 = smov 64   ;;  %s938_s9 = smov 4  }
  0x2b   : > { %793 = dma.hbm_to_vmem [thread:$0]  (!%p1035_p12), %s1031_s8, 128, %s1039_s10, %s1041_s12, %s937_s7, %s937_s7, %s938_s9  }
  0x2c   : > { %p730_p0 = scmp.ge.s32.totalorder %s934_s18, 1  ;;  %p214_p2 = scmp.lt.s32.totalorder %s934_s18, 5 }
  0x2e   : > { %p215_p7 = pnand %p730_p0, %p214_p2 }
  0x2f   : > { %s1072_s13 = sand.u32 (!%p215_p7), 1, %s926_s16  }
  0x30   : > { %218 = sbr.rel (%p215_p7) target bundleno = 298 (0x12a), region = 36  ;;  %s731_s14 = sshll.u32 (!%p215_p7), %s1072_s13, 3 }
  0x31   : > { %s221_s20 = scalar_lea.sflag (!%p215_p7), [#allocation3], %s1072_s13  ;;  %s224_s22 = scalar_lea.vmem (!%p215_p7), [#allocation2], %s731_s14 }
  0x37   : > { %913 = dma.done.wait (%p1012_p6), %s221_s20, 128  }
  0x38   : > { %915 = vsyncadd (%p1012_p6), %s221_s20, 4294967168  ;;  %s733_s8 = sshll.u32 %s990_s19, 1  ;;  %v939_v0 = vmov 0.0   ;;  %vm940_vm0 = vmmov 0   ;;  %vm296_vm1 = vcmask 1043456   ;;  %vm292_vm2 = vcmask 31744  }
  0x39   : > { %762 = vmatprep.subr.mxu0 %v939_v0  ;;  %767 = vmatprep.subr.mxu1 %v939_v0  ;;  %p265_p10 = scmp.lt.s32.totalorder %s733_s8, 7  ;;  %v290_v1 = vld [vmem:[%s224_s22] sm:$0xf]  ;;  %v291_v2 = vld [vmem:[%s224_s22 + $0x4] sm:$0xf]  ;;  %s732_s9 = sshll.u32 %s1072_s13, 2 }
  0x3a   : > { %764 = vmatprep.mubr.msk.f32.mxu0 %vm940_vm0, %v939_v0  ;;  %769 = vmatprep.mubr.msk.f32.mxu1 %vm940_vm0, %v939_v0  ;;  %s263_s14 = scalar_lea.vmem [#allocation5], %s732_s9  ;;  %s753_s22 = sshll.u32 %s990_s19, 6  ;;  %vm598_vm3 = vcmask 58368  }
  0x3b   : > { %s1170_s8 = smov (!%p265_p10, %s733_s8), 7  ;;  %763 = vmatpush3.msk.msra.mxu0 %vm296_vm1, %v290_v1  ;;  %768 = vmatpush3.msk.msra.mxu1 %vm296_vm1, %v291_v2  ;;  %s615_s20 = sshll.u32 %s263_s14, 4  ;;  %s1104_s20 = int_to_ptr.vmem [resolvable:$true] %s615_s20 }
  0x3c   : > { %s734_s10 = sshll.u32 %s1170_s8, 1  ;;  %s738_s11 = sshll.u32 %s1170_s8, 2  ;;  %772 = vmatprep.subr.mxu0 %v939_v0  ;;  %777 = vmatprep.subr.mxu1 %v939_v0 }
  0x3d   : > { %s274_s26 = scalar_lea.vmem %s1153_s1, %s734_s10  ;;  %s280_s30 = scalar_lea.vmem %s1154_s2, %s738_s11 }
  0x3e   : > { %v288_v3 = vld [vmem:[%s274_s26] sm:$0x3]  ;;  %v289_v4 = vld [vmem:[%s274_s26 + $0x2] sm:$0x3]  ;;  %v287_v6 = vld [vmem:[%s280_s30 + $0x4] sm:$0xf]  ;;  %s268_s7 = scalar_lea.vmem %s1152_s0, %s734_s10  ;;  %s1109_s11 = scalar_lea.hbm %s1156_s4, %s753_s22 }
  0x3f   : > { %v286_v5 = vld [vmem:[%s280_s30] sm:$0xf]  ;;  %765 = vmatmul.mubr.msk.f32.vlgmr.msra.gmra.mrb[0].mxu0 %vm292_vm2, %v288_v3  ;;  %770 = vmatmul.mubr.msk.f32.vlgmr.msra.gmra.mrb[0].mxu1 %vm292_vm2, %v289_v4  ;;  %s602_s12 = scalar_lea.sflag [#allocation4], %s1072_s13  ;;  %s868_s23 = scalar_lea.vmem %s1104_s20, 64 }
  0x40   : > { %773 = vmatpush3.msk.msra.mxu0 %vm296_vm1, %v286_v5  ;;  %778 = vmatpush3.msk.msra.mxu1 %vm296_vm1, %v287_v6  ;;  %v284_v7 = vld [vmem:[%s268_s7] sm:$0x3]  ;;  %v285_v8 = vld [vmem:[%s268_s7 + $0x2] sm:$0x3]  ;;  %p869_p6 = scmp.ne.s32.totalorder %s1104_s20, %s868_s23  ;;  %p1163_p11 = scmp.ne.s32.totalorder %s1160_s27, 0 }
  0x41   : > { %774 = vmatprep.mubr.msk.f32.mxu0 %vm940_vm0, %v939_v0  ;;  %779 = vmatprep.mubr.msk.f32.mxu1 %vm940_vm0, %v939_v0  ;;  %s941_s19 = smov [#allocation5]  }
  0x42   : > { %p870_p12 = pnand %p869_p6, %p1163_p11  ;;  %s872_s26 = sshll.u32 %s941_s19, 4  ;;  %s873_s26 = int_to_ptr.vmem [resolvable:$false] %s872_s26 }
  0x43   : > { %s874_s25 = scalar_lea.vmem %s873_s26, 128  ;;  %p875_p9 = scmp.lt.s32.totalorder %s1104_s20, %s873_s26 }
  0x44   : > { %p871_p8 = pneg %p870_p12  ;;  %p876_p13 = scmp.lt.s32.totalorder %s874_s25, %s868_s23 }
  0x46   : > { %p877_p1 = por %p876_p13, %p875_p9 }
  0x47   : > { %775 = vmatmul.mubr.msk.f32.vlgmr.msra.gmra.mrb[0].mxu0 %vm292_vm2, %v284_v7  ;;  %780 = vmatmul.mubr.msk.f32.vlgmr.msra.gmra.mrb[0].mxu1 %vm292_vm2, %v285_v8 }
  0x48   : > { %p878_p3 = pnand %p877_p1, %p871_p8 }
 0x11a   : > { %v518_v9 = vpop.f32.mrb[0].mxu0  ;;  %v594_v10 = vpop.f32.mrb[0].mxu1 }
 0x11b   : > { %599 = vst.msk [vmem:[%s263_s14] sm:$0x3] %vm598_vm3, %v518_v9  ;;  %600 = vst.msk [vmem:[%s263_s14 + $0x2] sm:$0x3] %vm598_vm3, %v594_v10  ;;  %v776_v11 = vpop.f32.mrb[1].mxu0  ;;  %v781_v12 = vpop.f32.mrb[1].mxu1 }
 0x11c   : > { %881 = shalt.err (!%p878_p3)
}
 0x11d   : > { %s882_s29 = scalar_lea.hbm %s1109_s11, 64  ;;  %s886_s6 = scalar_lea.hbm %s1156_s4, 256 }
 0x11e   : > { %p883_p4 = scmp.ne.s32.totalorder %s1109_s11, %s882_s29  ;;  %p887_p2 = scmp.lt.u32.totalorder %s1109_s11, %s1156_s4 }
 0x11f   : > { %p888_p7 = scmp.lt.u32.totalorder %s886_s6, %s882_s29  ;;  %p890_p6 = scmp.lt.u32.totalorder %s882_s29, %s1109_s11 }
 0x120   : > { %p884_p5 = pnand %p883_p4, %p1163_p11 }
 0x121   : > { %p889_p10 = por %p888_p7, %p887_p2 }
 0x122   : > { %p885_p0 = pneg %p884_p5 }
 0x123   : > { %p891_p12 = por %p890_p6, %p889_p10 }
 0x125   : > { %p892_p8 = pnand %p891_p12, %p885_p0 }
 0x127   : > { %895 = shalt.err (!%p892_p8)
}
 0x128   : > { %s942_s14 = smov 32   ;;  %s943_s22 = smov 2  }
 0x129   : > { %788 = dma.vmem_to_hbm [thread:$0]  (%p1163_p11), %s1104_s20, 64, %s1109_s11, %s602_s12, %s942_s14, %s942_s14, %s943_s22  }
 0x12a PF: > { %p799_p9 = scmp.ge.s32.totalorder %s934_s18, 2  ;;  %s630_s8 = sand.u32 1, %s922_s15  }
 0x12b   : > { %p1164_p13 = scmp.ne.s32.totalorder %s1161_s28, 0  ;;  %s631_s10 = scalar_lea.sflag [#allocation4], %s630_s8 }
 0x12d   : > { %p795_p1 = pnand %p799_p9, %p1164_p13 }
 0x12f   : > { %917 = dma.done.wait (!%p795_p1), %s631_s10, 64  }
 0x130   : > { %919 = vsyncadd (!%p795_p1), %s631_s10, 4294967232  ;;  %p17_p3 = scmp.ge.s32.totalorder %s994_s21, 6   ;;  %s1165_s15 = smov %s926_s16 }
 0x131   : > { %s1166_s16 = smov %s930_s17  ;;  %s1167_s17 = smov %s1006_s24 }
 0x132   : > { %s1168_s18 = smov %s994_s21  ;;  %19 = sbr.rel (!%p17_p3) target bundleno = 5 (0x5), region = 90 }
 0x139   :  { %636 = vsyncpa [#allocation3], 1 }
 0x13a   :  { %638 = vsyncpa [#allocation3 + $0x1], 1 }
 0x13b   :  { %639 = vsyncpa [#allocation4], 1 }
 0x13c   :  { %641 = vsyncpa [#allocation4 + $0x1], 1 }

</bundles_post_ra>
